<compile_context>
chip_gen: v6e
topology: v6e:2x2x1
jax: 0.10.0
libtpu: 0.0.40
codegen_flags: <defaults>
</compile_context>

<pallas_src>
import functools

import jax
import jax.numpy as jnp
from jax.experimental import pallas as pl
from jax.experimental.pallas import tpu as pltpu


def _label_smoothing_kernel(x_ref, t_ref, o_ref, acc_ref, *,
                            smoothing, num_classes, num_rows, tile_m):
    # Grid axis 0 walks row-tiles ("arbitrary"): acc scratch is resident across it.
    i = pl.program_id(0)

    @pl.when(i == 0)
    def _():
        acc_ref[...] = jnp.zeros_like(acc_ref)

    x = x_ref[...].astype(jnp.float32)                        # (TM, C)
    tgt = t_ref[...]                                          # (TM, 1) int32

    # Numerically stable logsumexp along the class (lane) axis.
    m = jnp.max(x, axis=-1, keepdims=True)                    # (TM, 1)
    lse = jnp.log(jnp.sum(jnp.exp(x - m), axis=-1, keepdims=True)) + m

    # Row reductions needed by the closed-form smoothed CE loss.
    sum_x = jnp.sum(x, axis=-1, keepdims=True)                # (TM, 1)
    col = jax.lax.broadcasted_iota(jnp.int32, x.shape, 1)     # (TM, C)
    x_tgt = jnp.sum(jnp.where(col == tgt, x, 0.0),
                    axis=-1, keepdims=True)                   # (TM, 1)

    # loss_row = -sum_c w_c * (x_c - lse)
    #          = -( off*(sum_x - C*lse) + (on - off)*(x_tgt - lse) )
    off = float(smoothing) / (num_classes - 1.0)
    on = 1.0 - float(smoothing)
    row_loss = -(jnp.float32(off) * (sum_x - jnp.float32(num_classes) * lse)
                 + jnp.float32(on - off) * (x_tgt - lse))     # (TM, 1)

    # Mask padded tail rows (global row index >= num_rows contributes 0).
    row_idx = i * tile_m + jax.lax.broadcasted_iota(jnp.int32, (tile_m, 1), 0)
    row_loss = jnp.where(row_idx < num_rows, row_loss, 0.0)

    acc_ref[...] += jnp.sum(row_loss).reshape(1, 1)

    @pl.when(i == pl.num_programs(0) - 1)
    def _():
        o_ref[...] = acc_ref[...] * jnp.float32(1.0 / num_rows)


def label_smoothing_loss(x, target, smoothing=0.1, *,
                         vmem_block_budget=16 * 1024 * 1024, max_tile_m=1024):
    """x: (N, C) float, target: (N,) int. Returns scalar f32 mean loss."""
    n, c = x.shape
    itemsize = jnp.dtype(x.dtype).itemsize
    # Sublane packing multiple: 8 (f32), 16 (bf16), 32 (int8).
    packing = max(8, 32 // itemsize)

    # Pick the largest row tile such that the double-buffered input blocks fit
    # the VMEM block budget (x block + int32 target block), capped at max_tile_m
    # and at N rounded up to the packing multiple (no pointless padding).
    bytes_per_row = c * itemsize + 4
    tile_m = vmem_block_budget // (2 * bytes_per_row)
    tile_m = min(tile_m, max_tile_m, -(-n // packing) * packing)
    tile_m = max(packing, (tile_m // packing) * packing)

    # Pad N up to a multiple of tile_m; padded rows are masked inside the kernel.
    n_pad = -(-n // tile_m) * tile_m
    if n_pad != n:
        x = jnp.pad(x, ((0, n_pad - n), (0, 0)))
        target = jnp.pad(target, (0, n_pad - n))
    target2d = target.astype(jnp.int32).reshape(n_pad, 1)

    kernel = functools.partial(
        _label_smoothing_kernel,
        smoothing=float(smoothing),
        num_classes=c,
        num_rows=n,
        tile_m=tile_m,
    )

    out = pl.pallas_call(
        kernel,
        out_shape=jax.ShapeDtypeStruct((1, 1), jnp.float32),
        grid_spec=pltpu.PrefetchScalarGridSpec(
            num_scalar_prefetch=0,
            grid=(n_pad // tile_m,),
            in_specs=[
                pl.BlockSpec((tile_m, c), lambda i: (i, 0)),
                pl.BlockSpec((tile_m, 1), lambda i: (i, 0)),
            ],
            out_specs=pl.BlockSpec((1, 1), lambda i: (0, 0)),
            scratch_shapes=[pltpu.VMEM((1, 1), jnp.float32)],
        ),
        compiler_params=pltpu.CompilerParams(
            dimension_semantics=("arbitrary",),  # reduction axis -> accumulator
            vmem_limit_bytes=32 * 1024 * 1024,
        ),
    )(x, target2d)
    return out[0, 0]


def _reference(x, target, smoothing):
    # Pure-JAX reference mirroring the PyTorch module.
    log_prob = jax.nn.log_softmax(x.astype(jnp.float32), axis=-1)
    c = x.shape[-1]
    weight = jnp.full(x.shape, smoothing / (c - 1.0), dtype=jnp.float32)
    onehot = jax.nn.one_hot(target, c, dtype=jnp.float32)
    weight = weight * (1.0 - onehot) + onehot * (1.0 - smoothing)
    return jnp.mean(jnp.sum(-weight * log_prob, axis=-1))


if __name__ == "__main__":
    key = jax.random.PRNGKey(0)
    kx, kt, kx2, kt2 = jax.random.split(key, 4)
    smoothing = 0.1

    # Case 1: N divisible by the tile.
    N, C = 16, 32
    x = jax.random.normal(kx, (N, C), dtype=jnp.float32)
    target = jax.random.randint(kt, (N,), 0, C, dtype=jnp.int32)
    loss = jax.block_until_ready(label_smoothing_loss(x, target, smoothing=smoothing))
    ref = _reference(x, target, smoothing)
    assert jnp.allclose(loss, ref, atol=1e-5, rtol=1e-5), (loss, ref)

    # Case 2: ragged N (exercises padding + tail masking).
    N2, C2 = 13, 40
    x2 = jax.random.normal(kx2, (N2, C2), dtype=jnp.float32)
    target2 = jax.random.randint(kt2, (N2,), 0, C2, dtype=jnp.int32)
    loss2 = jax.block_until_ready(label_smoothing_loss(x2, target2, smoothing=smoothing))
    ref2 = _reference(x2, target2, smoothing)
    assert jnp.allclose(loss2, ref2, atol=1e-5, rtol=1e-5), (loss2, ref2)

    print("KERNEL_OK")
</pallas_src>

<mosaic_0001>
module attributes {stable_mosaic.version = 11 : i64} {
  func.func @_label_smoothing_kernel(%arg0: i32, %arg1: memref<16x32xf32, #tpu.memory_space<vmem>>, %arg2: memref<16x1xi32, #tpu.memory_space<vmem>>, %arg3: memref<1x1xf32, #tpu.memory_space<vmem>>, %arg4: memref<1x1xf32, #tpu.memory_space<vmem>>) attributes {dimension_semantics = [#tpu.dimension_semantics<arbitrary>], iteration_bounds = array<i64: 1>, scalar_prefetch = 0 : i64, scratch_operands = 1 : i64, tpu.core_type = #tpu.core_type<tc>, window_params = [{transform_indices = @transform_0, window_bounds = array<i64: 16, 32>}, {transform_indices = @transform_1, window_bounds = array<i64: 16, 1>}, {pipeline_mode = #tpu.pipeline_mode<synchronous>, transform_indices = @transform_2, window_bounds = array<i64: 1, 1>}]} {
    %c0_i32 = arith.constant 0 : i32
    %0 = arith.cmpi eq, %arg0, %c0_i32 : i32
    %1 = arith.extui %0 : i1 to i32
    %c0_i32_0 = arith.constant 0 : i32
    %2 = arith.cmpi ne, %1, %c0_i32_0 : i32
    scf.if %2 {
      %cst_21 = arith.constant 0.000000e+00 : f32
      %53 = vector.broadcast %cst_21 : f32 to vector<1x1xf32>
      %c0_22 = arith.constant 0 : index
      %c0_23 = arith.constant 0 : index
      %54 = vector.load %arg4[%c0_22, %c0_23] : memref<1x1xf32, #tpu.memory_space<vmem>>, vector<1x1xf32>
      tpu.vector_store %arg4[%c0_22, %c0_23], %53 {strides = array<i32>} : memref<1x1xf32, #tpu.memory_space<vmem>>, vector<1x1xf32>,
    } else {
    }
    %c0 = arith.constant 0 : index
    %c0_1 = arith.constant 0 : index
    %3 = vector.load %arg1[%c0, %c0_1] : memref<16x32xf32, #tpu.memory_space<vmem>>, vector<16x32xf32>
    %c0_2 = arith.constant 0 : index
    %c0_3 = arith.constant 0 : index
    %4 = vector.load %arg2[%c0_2, %c0_3] : memref<16x1xi32, #tpu.memory_space<vmem>>, vector<16x1xi32>
    %cst = arith.constant dense<0xFF800000> : vector<16xf32>
    %5 = vector.multi_reduction <maximumf>, %3, %cst [1] : vector<16x32xf32> to vector<16xf32>
    %6 = vector.shape_cast %5 : vector<16xf32> to vector<16x1xf32>
    %7 = vector.broadcast %6 : vector<16x1xf32> to vector<16x32xf32>
    %8 = arith.subf %3, %7 : vector<16x32xf32>
    %9 = math.exp %8 : vector<16x32xf32>
    %cst_4 = arith.constant dense<0.000000e+00> : vector<16xf32>
    %10 = vector.multi_reduction <add>, %9, %cst_4 [1] : vector<16x32xf32> to vector<16xf32>
    %11 = vector.shape_cast %10 : vector<16xf32> to vector<16x1xf32>
    %12 = math.log %11 : vector<16x1xf32>
    %13 = arith.addf %12, %6 : vector<16x1xf32>
    %cst_5 = arith.constant dense<0.000000e+00> : vector<16xf32>
    %14 = vector.multi_reduction <add>, %3, %cst_5 [1] : vector<16x32xf32> to vector<16xf32>
    %15 = vector.shape_cast %14 : vector<16xf32> to vector<16x1xf32>
    %16 = tpu.iota {dimensions = array<i32: 1>} : vector<16x32xi32>
    %17 = vector.broadcast %4 : vector<16x1xi32> to vector<16x32xi32>
    %18 = arith.cmpi eq, %16, %17 : vector<16x32xi32>
    %cst_6 = arith.constant 0.000000e+00 : f32
    %19 = vector.broadcast %cst_6 : f32 to vector<16x32xf32>
    %20 = arith.select %18, %3, %19 : vector<16x32xi1>, vector<16x32xf32>
    %cst_7 = arith.constant dense<0.000000e+00> : vector<16xf32>
    %21 = vector.multi_reduction <add>, %20, %cst_7 [1] : vector<16x32xf32> to vector<16xf32>
    %22 = vector.shape_cast %21 : vector<16xf32> to vector<16x1xf32>
    %cst_8 = arith.constant 3.200000e+01 : f32
    %23 = vector.broadcast %cst_8 : f32 to vector<16x1xf32>
    %24 = arith.mulf %23, %13 : vector<16x1xf32>
    %25 = arith.subf %15, %24 : vector<16x1xf32>
    %cst_9 = arith.constant 0.0032258064 : f32
    %26 = vector.broadcast %cst_9 : f32 to vector<16x1xf32>
    %27 = arith.mulf %26, %25 : vector<16x1xf32>
    %28 = arith.subf %22, %13 : vector<16x1xf32>
    %cst_10 = arith.constant 0.896774172 : f32
    %29 = vector.broadcast %cst_10 : f32 to vector<16x1xf32>
    %30 = arith.mulf %29, %28 : vector<16x1xf32>
    %31 = arith.addf %27, %30 : vector<16x1xf32>
    %cst_11 = arith.constant 0.000000e+00 : f32
    %32 = vector.broadcast %cst_11 : f32 to vector<16x1xf32>
    %33 = arith.subf %32, %31 : vector<16x1xf32>
    %c16_i32 = arith.constant 16 : i32
    %34 = arith.muli %arg0, %c16_i32 : i32
    %35 = tpu.iota {dimensions = array<i32: 0>} : vector<16x1xi32>
    %36 = vector.broadcast %34 : i32 to vector<16x1xi32>
    %37 = arith.addi %36, %35 : vector<16x1xi32>
    %c16_i32_12 = arith.constant 16 : i32
    %38 = vector.broadcast %c16_i32_12 : i32 to vector<16x1xi32>
    %39 = arith.cmpi slt, %37, %38 : vector<16x1xi32>
    %cst_13 = arith.constant 0.000000e+00 : f32
    %40 = vector.broadcast %cst_13 : f32 to vector<16x1xf32>
    %41 = arith.select %39, %33, %40 : vector<16x1xi1>, vector<16x1xf32>
    %c0_14 = arith.constant 0 : index
    %c0_15 = arith.constant 0 : index
    %42 = vector.load %arg4[%c0_14, %c0_15] : memref<1x1xf32, #tpu.memory_space<vmem>>, vector<1x1xf32>
    %43 = vector.shape_cast %41 : vector<16x1xf32> to vector<1x16x1xf32>
    %cst_16 = arith.constant dense<0.000000e+00> : vector<1xf32>
    %44 = vector.multi_reduction <add>, %43, %cst_16 [1, 2] : vector<1x16x1xf32> to vector<1xf32>
    %45 = vector.shape_cast %44 : vector<1xf32> to vector<1x1x1xf32>
    %46 = vector.extract %45[0, 0, 0] : f32 from vector<1x1x1xf32>
    %47 = vector.broadcast %46 : f32 to vector<1x1xf32>
    %48 = arith.addf %42, %47 : vector<1x1xf32>
    %c0_17 = arith.constant 0 : index
    %c0_18 = arith.constant 0 : index
    %49 = vector.load %arg4[%c0_17, %c0_18] : memref<1x1xf32, #tpu.memory_space<vmem>>, vector<1x1xf32>
    tpu.vector_store %arg4[%c0_17, %c0_18], %48 {strides = array<i32>} : memref<1x1xf32, #tpu.memory_space<vmem>>, vector<1x1xf32>,
    %c0_i32_19 = arith.constant 0 : i32
    %50 = arith.cmpi eq, %arg0, %c0_i32_19 : i32
    %51 = arith.extui %50 : i1 to i32
    %c0_i32_20 = arith.constant 0 : i32
    %52 = arith.cmpi ne, %51, %c0_i32_20 : i32
    scf.if %52 {
      %c0_21 = arith.constant 0 : index
      %c0_22 = arith.constant 0 : index
      %53 = vector.load %arg4[%c0_21, %c0_22] : memref<1x1xf32, #tpu.memory_space<vmem>>, vector<1x1xf32>
      %cst_23 = arith.constant 6.250000e-02 : f32
      %54 = vector.broadcast %cst_23 : f32 to vector<1x1xf32>
      %55 = arith.mulf %53, %54 : vector<1x1xf32>
      %c0_24 = arith.constant 0 : index
      %c0_25 = arith.constant 0 : index
      %56 = vector.load %arg3[%c0_24, %c0_25] : memref<1x1xf32, #tpu.memory_space<vmem>>, vector<1x1xf32>
      tpu.vector_store %arg3[%c0_24, %c0_25], %55 {strides = array<i32>} : memref<1x1xf32, #tpu.memory_space<vmem>>, vector<1x1xf32>,
    } else {
    }
    return
  }
  func.func @transform_0(%arg0: i32) -> (i32, i32) {
    %c0_i32 = arith.constant 0 : i32
    %c0_i32_0 = arith.constant 0 : i32
    return %arg0, %c0_i32 : i32, i32
  }
  func.func @transform_1(%arg0: i32) -> (i32, i32) {
    %c0_i32 = arith.constant 0 : i32
    %c0_i32_0 = arith.constant 0 : i32
    return %arg0, %c0_i32 : i32, i32
  }
  func.func @transform_2(%arg0: i32) -> (i32, i32) {
    %c0_i32 = arith.constant 0 : i32
    %c0_i32_0 = arith.constant 0 : i32
    %c0_i32_1 = arith.constant 0 : i32
    return %c0_i32, %c0_i32_0 : i32, i32
  }
}

</mosaic_0001>

<bundles_post_ra>
// kernel: tpu_custom_call.1
= control target key start
LH: loop header
LB: loop body
LE: loop exit
PB: predicated region body
PF: predicated region fallthrough
CT: control target
= control target key end

     0   :  { %vm22_vm0 = vcmask 261120   ;;  %v171_v4 = vmov 0   ;;  %s215_s0 = inlined_call_operand.vmem [shape: f32[16,32], index: 0, kind: input, shape index: {}]   ;;  %s216_s1 = inlined_call_operand.vmem [shape: s32[16,1], index: 1, kind: input, shape index: {}]   ;;  %s217_s2 = inlined_call_operand.hbm [shape: f32[1,1], index: 2, kind: output, shape index: {}]  }
   0x1   :  { %v18_v0 = vld [vmem:[%s215_s0] sm:$0xff]  ;;  %v19_v1 = vld [vmem:[%s215_s0 + $0x8] sm:$0xff]  ;;  %139 = vset.pattern.permute.xlu1 %v171_v4  ;;  %140 = vset.pattern.permute.xlu0 %v171_v4 }
   0x2   :  { %v20_v2 = vld [vmem:[%s216_s1] sm:$0xff]  ;;  %v23_v3 = vsel %vm22_vm0, %v18_v0, -inf }
   0x3   :  { %7 = vsyncpa [#allocation4], 0  ;;  %24 = vmax.xlane.f32.xlu0 %v23_v3  ;;  %56 = vperm.xlu1 %139, %v20_v2   ;;  %v26_v5 = vsel %vm22_vm0, %v19_v1, -inf  ;;  %v21_v6 = vld [vmem:[%s216_s1 + $0x8] sm:$0xff]  ;;  %v53_v13 = vlaneseq  ;;  %v47_v18 = vsel %vm22_vm0, %v18_v0, 0.0  ;;  %v50_v22 = vsel %vm22_vm0, %v19_v1, 0.0 }
   0x4   :  { %vm97_vm3 = vcmask 7168   ;;  %vm16_vm4 = vcmask 0   ;;  %v172_v56 = vmov 0.0   ;;  %s173_s1 = smov [#allocation3]  }
   0x5   :  { %v54_v17 = vand.u32 127, %v53_v13  ;;  %17 = vst.msk [vmem:[#allocation2] sm:$0x1] %vm16_vm4, %v172_v56  ;;  %s126_s17 = sshll.u32 %s173_s1, 4  ;;  %s127_s17 = int_to_ptr.vmem [resolvable:$true] %s126_s17 }
   0x6   :  { %s149_s18 = scalar_lea.vmem %s127_s17, 16  ;;  %s153_s19 = scalar_lea.vmem %s127_s17, 32 }
   0x7   :  { %27 = vmax.xlane.f32.xlu0 %v26_v5  ;;  %59 = vperm.xlu1 %139, %v21_v6   ;;  %p150_p0 = scmp.ne.s32.totalorder %s127_s17, %s149_s18  ;;  %p154_p1 = scmp.lt.s32.totalorder %s127_s17, %s127_s17 }
   0x8   :  { %p155_p2 = scmp.lt.s32.totalorder %s153_s19, %s149_s18 }
   0xa   :  { %p156_p3 = por %p155_p2, %p154_p1 }
   0xc   :  { %p157_p4 = pnand %p156_p3, %p150_p0 }
  0x7e   :  { %v57_v15 = vpop.permute.xlu1 %56 }
  0x7f   :  { %vm61_vm1 = vcmp.eq.s32.totalorder %v54_v17, %v57_v15 }
  0x80   :  { %v63_v23 = vsel %vm61_vm1, %v18_v0, 0.0 }
  0x81   :  { %v65_v24 = vsel %vm22_vm0, %v63_v23, 0.0 }
  0x82   :  { %v60_v21 = vpop.permute.xlu1 %59 }
  0x83   :  { %vm62_vm2 = vcmp.eq.s32.totalorder %v54_v17, %v60_v21 }
  0x84   :  { %v64_v25 = vsel %vm62_vm2, %v19_v1, 0.0 }
  0x85   :  { %v68_v26 = vsel %vm22_vm0, %v64_v25, 0.0 }
  0x8c   :  { %v25_v7 = vpop.xlane.xlu0 %24 }
  0x8d   :  { %v29_v8 = vsub.f32 %v18_v0, %v25_v7  ;;  %v96_v0 = vld [vmem:[#allocation2] sm:$0x1] }
  0x8f   :  { %v31_v9 = vmul.f32 1.442695, %v29_v8 }
  0x90   :  { %v28_v10 = vpop.xlane.xlu0 %27 }
  0x91   :  { %141 = vpow2.f32 %v31_v9  ;;  %v30_v11 = vsub.f32 %v19_v1, %v28_v10 }
  0x93   :  { %v33_v12 = vmul.f32 1.442695, %v30_v11 }
  0x95   :  { %143 = vpow2.f32 %v33_v12 }
  0x9e   :  { %v142_v14 = vpop.eup %141 }
  0x9f   :  { %v35_v16 = vsel %vm22_vm0, %v142_v14, 0.0 }
  0xa0   :  { %36 = vadd.xlane.f32.xlu0 %v35_v16 }
  0xa2   :  { %v144_v19 = vpop.eup %143 }
  0xa3   :  { %v38_v20 = vsel %vm22_vm0, %v144_v19, 0.0 }
  0xa4   :  { %39 = vadd.xlane.f32.xlu1 %v38_v20  ;;  %48 = vadd.xlane.f32.xlu0 %v47_v18 }
  0xa8   :  { %51 = vadd.xlane.f32.xlu0 %v50_v22 }
  0xac   :  { %66 = vadd.xlane.f32.xlu0 %v65_v24 }
  0xb0   :  { %69 = vadd.xlane.f32.xlu0 %v68_v26 }
 0x129   :  { %v37_v27 = vpop.xlane.xlu0 %36 }
 0x12a   :  { %145 = vlog2.f32 %v37_v27 }
 0x12d   :  { %v40_v28 = vpop.xlane.xlu1 %39  ;;  %v49_v29 = vpop.xlane.xlu0 %48 }
 0x12e   :  { %147 = vlog2.f32 %v40_v28 }
 0x131   :  { %v52_v30 = vpop.xlane.xlu0 %51 }
 0x135   :  { %v67_v33 = vpop.xlane.xlu0 %66 }
 0x137   :  { %v146_v31 = vpop.eup %145 }
 0x138   :  { %v42_v32 = vmul.f32 0.6931472, %v146_v31 }
 0x139   :  { %v70_v41 = vpop.xlane.xlu0 %69 }
 0x13a   :  { %v45_v34 = vadd.f32 %v42_v32, %v25_v7 }
 0x13b   :  { %v148_v35 = vpop.eup %147 }
 0x13c   :  { %v44_v36 = vmul.f32 0.6931472, %v148_v35  ;;  %v71_v37 = vmul.f32 32.0, %v45_v34  ;;  %v77_v38 = vsub.f32 %v67_v33, %v45_v34 }
 0x13e   :  { %v73_v39 = vsub.f32 %v49_v29, %v71_v37  ;;  %v46_v40 = vadd.f32 %v44_v36, %v28_v10  ;;  %v79_v44 = vmul.f32 0.8967742, %v77_v38 }
 0x140   :  { %v75_v42 = vmul.f32 0.0032258064, %v73_v39  ;;  %v72_v43 = vmul.f32 32.0, %v46_v40  ;;  %v78_v45 = vsub.f32 %v70_v41, %v46_v40 }
 0x142   :  { %v74_v46 = vsub.f32 %v52_v30, %v72_v43  ;;  %v81_v47 = vadd.f32 %v79_v44, %v75_v42  ;;  %v80_v49 = vmul.f32 0.8967742, %v78_v45 }
 0x144   :  { %v76_v48 = vmul.f32 0.0032258064, %v74_v46  ;;  %v83_v50 = vsub.f32 0.0, %v81_v47 }
 0x146   :  { %v82_v51 = vadd.f32 %v80_v49, %v76_v48  ;;  %v98_v53 = vsel %vm97_vm3, %v83_v50, 0.0 }
 0x148   :  { %v84_v52 = vsub.f32 0.0, %v82_v51 }
 0x14a   :  { %v99_v54 = vsel %vm97_vm3, %v84_v52, 0.0 }
 0x14b   :  { %v100_v55 = vadd.f32 %v99_v54, %v98_v53 }
 0x14d   :  { %101 = vadd.xlane.f32.xlu0 %v100_v55 }
 0x1d6   :  { %v102_v57 = vpop.xlane.xlu0 %101 }
 0x1d7   :  { %v103_v58 = vrot.slane %v102_v57, 4 }
 0x1d9   :  { %v104_v59 = vadd.f32 %v103_v58, %v102_v57 }
 0x1db   :  { %v105_v60 = vrot.slane %v104_v59, 2 }
 0x1dd   :  { %v106_v61 = vadd.f32 %v105_v60, %v104_v59 }
 0x1df   :  { %v107_v62 = vrot.slane %v106_v61, 1 }
 0x1e1   :  { %v108_v63 = vadd.f32 %v107_v62, %v106_v61 }
 0x1e3   :  { %134 = vpush %v108_v63 }
 0x214   :  { %s135_s0 = spop %134 }
 0x215   :  { %v110_v1 = vstv %s135_s0 }
 0x216   :  { %v111_v2 = vadd.f32 %v110_v1, %v96_v0 }
 0x218   :  { %113 = vst.msk [vmem:[#allocation2] sm:$0x1] %vm16_vm4, %v111_v2 }
 0x21f   :  { %v117_v3 = vld [vmem:[#allocation2] sm:$0x1] }
 0x220   :  { %v118_v4 = vmul.f32 0.0625, %v117_v3 }
 0x222   :  { %119 = vst.msk [vmem:[#allocation3] sm:$0x1] %vm16_vm4, %v118_v4 }
 0x223   :  { %160 = shalt.err (!%p157_p4)
}
 0x224   :  { %129 = dma.vmem_to_hbm [thread:$0]  %s127_s17, 16, %s217_s2, [#allocation4]  }
 0x225   :  { %169 = dma.done.wait [#allocation4], 16  }
 0x226   :  { %170 = vsyncadd [#allocation4], 4294967280 }
 0x227   :  { %133 = vsyncpa [#allocation4], 1 }

</bundles_post_ra>
